<compile_context>
chip_gen: v6e
topology: v6e:2x2x1
jax: 0.10.0
libtpu: 0.0.40
codegen_flags: <defaults>
</compile_context>

<pallas_src>
import functools

import jax
import jax.numpy as jnp
from jax.experimental import pallas as pl
from jax.experimental.pallas import tpu as pltpu


# ----------------------------------------------------------------------------
# Kernel
# ----------------------------------------------------------------------------
def _mlp_kernel(u_ref, i_ref, w1_ref, b1_ref, w2_ref, b2_ref, o_ref,
                *, upcast_product):
    u = u_ref[...]
    it = i_ref[...]
    if upcast_product:
        # v5e has no bf16 VALU: upcast before the elementwise product.
        u = u.astype(jnp.float32)
        it = it.astype(jnp.float32)
    x = u * it                                                   # VPU

    # Layer 1: Linear(64 -> 32) + ReLU   (MXU, f32 accumulation)
    h = jnp.dot(x, w1_ref[...], preferred_element_type=jnp.float32) + b1_ref[...]
    h = jnp.maximum(h, 0.0)

    # Layer 2: Linear(32 -> latent_dim) + ReLU
    y = jnp.dot(h, w2_ref[...], preferred_element_type=jnp.float32) + b2_ref[...]
    o_ref[...] = jnp.maximum(y, 0.0).astype(o_ref.dtype)


# ----------------------------------------------------------------------------
# Generation-aware defaults
# ----------------------------------------------------------------------------
_GEN_CONFIG = {
    # block_b_max, vmem_limit_bytes, has bf16 VPU
    "v7x":     dict(block_b_max=8192, vmem_limit_bytes=48 * 1024 * 1024, bf16_vpu=True),
    "v6e":     dict(block_b_max=8192, vmem_limit_bytes=64 * 1024 * 1024, bf16_vpu=True),
    "v5":      dict(block_b_max=2048, vmem_limit_bytes=None,             bf16_vpu=False),
    "unknown": dict(block_b_max=2048, vmem_limit_bytes=None,             bf16_vpu=False),
}


def _tpu_generation():
    try:
        kind = jax.devices()[0].device_kind.lower()
    except Exception:  # pragma: no cover - be conservative off-TPU
        return "unknown"
    if "v7" in kind or "7x" in kind:
        return "v7x"
    if "v6" in kind or "trillium" in kind:
        return "v6e"
    if "v5" in kind:
        return "v5"
    return "unknown"


def _round_up(x, m):
    return ((x + m - 1) // m) * m


# ----------------------------------------------------------------------------
# pallas_call wrapper
# ----------------------------------------------------------------------------
@functools.partial(
    jax.jit,
    static_argnames=("block_b", "out_dtype", "upcast_product", "vmem_limit_bytes"),
)
def _mlp_base_call(user_embed, item_embed, w1, b1, w2, b2, *,
                   block_b, out_dtype, upcast_product, vmem_limit_bytes):
    B, d_in = user_embed.shape
    h_dim = w1.shape[1]
    d_out = w2.shape[1]

    grid = (pl.cdiv(B, block_b),)

    itemsize_in = jnp.dtype(user_embed.dtype).itemsize
    bytes_accessed = (
        2 * B * d_in * itemsize_in                                  # embeddings
        + (d_in * h_dim + h_dim + h_dim * d_out + d_out) * 4        # weights/biases
        + B * d_out * jnp.dtype(out_dtype).itemsize                 # output
    )
    cost = pl.CostEstimate(
        flops=2 * B * (d_in * h_dim + h_dim * d_out),
        transcendentals=0,
        bytes_accessed=bytes_accessed,
    )

    kernel = functools.partial(_mlp_kernel, upcast_product=upcast_product)

    return pl.pallas_call(
        kernel,
        out_shape=jax.ShapeDtypeStruct((B, d_out), out_dtype),
        grid_spec=pltpu.PrefetchScalarGridSpec(
            num_scalar_prefetch=0,
            grid=grid,
            in_specs=[
                pl.BlockSpec((block_b, d_in), lambda i: (i, 0)),   # user_embed tile
                pl.BlockSpec((block_b, d_in), lambda i: (i, 0)),   # item_embed tile
                pl.BlockSpec((d_in, h_dim), lambda i: (0, 0)),     # W1 (VMEM-resident)
                pl.BlockSpec((1, h_dim), lambda i: (0, 0)),        # b1
                pl.BlockSpec((h_dim, d_out), lambda i: (0, 0)),    # W2 (VMEM-resident)
                pl.BlockSpec((1, d_out), lambda i: (0, 0)),        # b2
            ],
            out_specs=pl.BlockSpec((block_b, d_out), lambda i: (i, 0)),
        ),
        compiler_params=pltpu.CompilerParams(
            dimension_semantics=("parallel",),
            vmem_limit_bytes=vmem_limit_bytes,
        ),
        cost_estimate=cost,
    )(user_embed, item_embed, w1, b1, w2, b2)


def mlp_base_forward(user_embed, item_embed, w1, b1, w2, b2, *,
                     block_b_max=None, out_dtype=None):
    """Fused (u*i) -> Linear -> ReLU -> Linear -> ReLU Pallas kernel.

    user_embed, item_embed : (B, D_in)  -- any B, any dtype already in HBM
                                           (no wrapper-side cast/pad passes)
    w1 : (D_in, H)   b1 : (1, H)        -- PyTorch weights pre-transposed
    w2 : (H, D_out)  b2 : (1, D_out)
    returns (B, D_out) in `out_dtype` (default: dtype of user_embed).
    """
    B = user_embed.shape[0]
    cfg = _GEN_CONFIG[_tpu_generation()]

    if block_b_max is None:
        block_b_max = cfg["block_b_max"]
    # Batch tile: largest tile up to block_b_max, always a sublane multiple (8).
    block_b = min(_round_up(block_b_max, 8), _round_up(B, 8))

    if out_dtype is None:
        out_dtype = user_embed.dtype
    out_dtype = jnp.dtype(out_dtype)

    upcast_product = (jnp.dtype(user_embed.dtype) != jnp.float32) and not cfg["bf16_vpu"]

    return _mlp_base_call(
        user_embed, item_embed, w1, b1, w2, b2,
        block_b=block_b,
        out_dtype=out_dtype,
        upcast_product=upcast_product,
        vmem_limit_bytes=cfg["vmem_limit_bytes"],
    )


# ----------------------------------------------------------------------------
# Reference + test harness
# ----------------------------------------------------------------------------
def _init_linear(key, fan_in, fan_out, dtype=jnp.float32):
    """Deterministic init mimicking torch.nn.Linear defaults (U(+-1/sqrt(fan_in)))."""
    kw, kb = jax.random.split(key)
    bound = 1.0 / jnp.sqrt(fan_in)
    w = jax.random.uniform(kw, (fan_in, fan_out), dtype, -bound, bound)  # (in, out)
    b = jax.random.uniform(kb, (1, fan_out), dtype, -bound, bound)
    return w, b


def _reference(u, i, w1, b1, w2, b2):
    x = u * i
    h = jnp.maximum(x @ w1 + b1, 0.0)
    return jnp.maximum(h @ w2 + b2, 0.0)


if __name__ == "__main__":
    # MLPBase(latent_dim=16, hidden_dims=(64, 32)):
    #   dims = [64, 32, 16]  ->  Linear(64,32), Linear(32,16)
    latent_dim = 16
    hidden_dims = (64, 32)

    key = jax.random.PRNGKey(0)
    k_u, k_i, k_l1, k_l2 = jax.random.split(key, 4)

    w1, b1 = _init_linear(k_l1, hidden_dims[0], hidden_dims[1])
    w2, b2 = _init_linear(k_l2, hidden_dims[1], latent_dim)

    # --- check 1: f32 path, single tile -------------------------------------
    batch = 24
    u = jax.random.normal(k_u, (batch, hidden_dims[0]), jnp.float32)
    v = jax.random.normal(k_i, (batch, hidden_dims[0]), jnp.float32)

    out = mlp_base_forward(u, v, w1, b1, w2, b2)
    out = jax.block_until_ready(out)
    ref = _reference(u, v, w1, b1, w2, b2)
    assert out.shape == (batch, latent_dim)
    assert jnp.allclose(out, ref, atol=1e-5, rtol=1e-5), "f32 mismatch vs reference"

    # --- check 2: ragged batch, multi-step grid + masked partial tile -------
    batch2 = 20
    u2, v2 = u[:batch2], v[:batch2]
    out2 = mlp_base_forward(u2, v2, w1, b1, w2, b2, block_b_max=8)
    out2 = jax.block_until_ready(out2)
    assert out2.shape == (batch2, latent_dim)
    assert jnp.allclose(out2, ref[:batch2], atol=1e-5, rtol=1e-5), "ragged-batch mismatch"

    # --- check 3: embeddings already stored as bf16 in HBM ------------------
    u_bf = u.astype(jnp.bfloat16)
    v_bf = v.astype(jnp.bfloat16)
    out3 = mlp_base_forward(u_bf, v_bf, w1, b1, w2, b2, out_dtype=jnp.float32)
    out3 = jax.block_until_ready(out3)
    ref3 = _reference(u_bf.astype(jnp.float32), v_bf.astype(jnp.float32), w1, b1, w2, b2)
    # product may be rounded to bf16 on chips with a bf16 VPU -> loose tolerance
    assert jnp.allclose(out3, ref3, atol=1e-1, rtol=5e-2), "bf16-input mismatch"

    print("KERNEL_OK")
</pallas_src>

<mosaic_0001>
module attributes {stable_mosaic.version = 11 : i64} {
  func.func @_mlp_kernel(%arg0: i32, %arg1: memref<24x64xf32, #tpu.memory_space<vmem>>, %arg2: memref<24x64xf32, #tpu.memory_space<vmem>>, %arg3: memref<64x32xf32, #tpu.memory_space<vmem>>, %arg4: memref<1x32xf32, #tpu.memory_space<vmem>>, %arg5: memref<32x16xf32, #tpu.memory_space<vmem>>, %arg6: memref<1x16xf32, #tpu.memory_space<vmem>>, %arg7: memref<24x16xf32, #tpu.memory_space<vmem>>) attributes {dimension_semantics = [#tpu.dimension_semantics<parallel>], iteration_bounds = array<i64: 1>, scalar_prefetch = 0 : i64, scratch_operands = 0 : i64, tpu.core_type = #tpu.core_type<tc>, window_params = [{transform_indices = @transform_0, window_bounds = array<i64: 24, 64>}, {transform_indices = @transform_1, window_bounds = array<i64: 24, 64>}, {pipeline_mode = #tpu.pipeline_mode<synchronous>, transform_indices = @transform_2, window_bounds = array<i64: 64, 32>}, {pipeline_mode = #tpu.pipeline_mode<synchronous>, transform_indices = @transform_3, window_bounds = array<i64: 1, 32>}, {pipeline_mode = #tpu.pipeline_mode<synchronous>, transform_indices = @transform_4, window_bounds = array<i64: 32, 16>}, {pipeline_mode = #tpu.pipeline_mode<synchronous>, transform_indices = @transform_5, window_bounds = array<i64: 1, 16>}, {transform_indices = @transform_6, window_bounds = array<i64: 24, 16>}]} {
    %c0 = arith.constant 0 : index
    %c0_0 = arith.constant 0 : index
    %0 = vector.load %arg1[%c0, %c0_0] : memref<24x64xf32, #tpu.memory_space<vmem>>, vector<24x64xf32>
    %c0_1 = arith.constant 0 : index
    %c0_2 = arith.constant 0 : index
    %1 = vector.load %arg2[%c0_1, %c0_2] : memref<24x64xf32, #tpu.memory_space<vmem>>, vector<24x64xf32>
    %2 = arith.mulf %0, %1 : vector<24x64xf32>
    %c0_3 = arith.constant 0 : index
    %c0_4 = arith.constant 0 : index
    %3 = vector.load %arg3[%c0_3, %c0_4] : memref<64x32xf32, #tpu.memory_space<vmem>>, vector<64x32xf32>
    %cst = arith.constant dense<0.000000e+00> : vector<24x32xf32>
    %4 = tpu.matmul %2, %3, %cst {dimension_numbers = #tpu.dot_dimension_numbers<[1], [0], [0], [1], [0, 0, 1, 1], [], []>} : vector<24x64xf32>, vector<64x32xf32>, vector<24x32xf32> -> vector<24x32xf32>
    %c0_5 = arith.constant 0 : index
    %c0_6 = arith.constant 0 : index
    %5 = vector.load %arg4[%c0_5, %c0_6] : memref<1x32xf32, #tpu.memory_space<vmem>>, vector<1x32xf32>
    %6 = vector.broadcast %5 : vector<1x32xf32> to vector<24x32xf32>
    %7 = arith.addf %4, %6 : vector<24x32xf32>
    %cst_7 = arith.constant 0.000000e+00 : f32
    %8 = vector.broadcast %cst_7 : f32 to vector<24x32xf32>
    %9 = arith.maximumf %7, %8 : vector<24x32xf32>
    %c0_8 = arith.constant 0 : index
    %c0_9 = arith.constant 0 : index
    %10 = vector.load %arg5[%c0_8, %c0_9] : memref<32x16xf32, #tpu.memory_space<vmem>>, vector<32x16xf32>
    %cst_10 = arith.constant dense<0.000000e+00> : vector<24x16xf32>
    %11 = tpu.matmul %9, %10, %cst_10 {dimension_numbers = #tpu.dot_dimension_numbers<[1], [0], [0], [1], [0, 0, 1, 1], [], []>} : vector<24x32xf32>, vector<32x16xf32>, vector<24x16xf32> -> vector<24x16xf32>
    %c0_11 = arith.constant 0 : index
    %c0_12 = arith.constant 0 : index
    %12 = vector.load %arg6[%c0_11, %c0_12] : memref<1x16xf32, #tpu.memory_space<vmem>>, vector<1x16xf32>
    %13 = vector.broadcast %12 : vector<1x16xf32> to vector<24x16xf32>
    %14 = arith.addf %11, %13 : vector<24x16xf32>
    %cst_13 = arith.constant 0.000000e+00 : f32
    %15 = vector.broadcast %cst_13 : f32 to vector<24x16xf32>
    %16 = arith.maximumf %14, %15 : vector<24x16xf32>
    %c0_14 = arith.constant 0 : index
    %c0_15 = arith.constant 0 : index
    %17 = vector.load %arg7[%c0_14, %c0_15] : memref<24x16xf32, #tpu.memory_space<vmem>>, vector<24x16xf32>
    tpu.vector_store %arg7[%c0_14, %c0_15], %16 {strides = array<i32>} : memref<24x16xf32, #tpu.memory_space<vmem>>, vector<24x16xf32>,
    return
  }
  func.func @transform_0(%arg0: i32) -> (i32, i32) {
    %c0_i32 = arith.constant 0 : i32
    %c0_i32_0 = arith.constant 0 : i32
    return %arg0, %c0_i32 : i32, i32
  }
  func.func @transform_1(%arg0: i32) -> (i32, i32) {
    %c0_i32 = arith.constant 0 : i32
    %c0_i32_0 = arith.constant 0 : i32
    return %arg0, %c0_i32 : i32, i32
  }
  func.func @transform_2(%arg0: i32) -> (i32, i32) {
    %c0_i32 = arith.constant 0 : i32
    %c0_i32_0 = arith.constant 0 : i32
    %c0_i32_1 = arith.constant 0 : i32
    return %c0_i32, %c0_i32_0 : i32, i32
  }
  func.func @transform_3(%arg0: i32) -> (i32, i32) {
    %c0_i32 = arith.constant 0 : i32
    %c0_i32_0 = arith.constant 0 : i32
    %c0_i32_1 = arith.constant 0 : i32
    return %c0_i32, %c0_i32_0 : i32, i32
  }
  func.func @transform_4(%arg0: i32) -> (i32, i32) {
    %c0_i32 = arith.constant 0 : i32
    %c0_i32_0 = arith.constant 0 : i32
    %c0_i32_1 = arith.constant 0 : i32
    return %c0_i32, %c0_i32_0 : i32, i32
  }
  func.func @transform_5(%arg0: i32) -> (i32, i32) {
    %c0_i32 = arith.constant 0 : i32
    %c0_i32_0 = arith.constant 0 : i32
    %c0_i32_1 = arith.constant 0 : i32
    return %c0_i32, %c0_i32_0 : i32, i32
  }
  func.func @transform_6(%arg0: i32) -> (i32, i32) {
    %c0_i32 = arith.constant 0 : i32
    %c0_i32_0 = arith.constant 0 : i32
    return %arg0, %c0_i32 : i32, i32
  }
}

</mosaic_0001>

<bundles_post_ra>
// kernel: _mlp_base_call.1
= control target key start
LH: loop header
LB: loop body
LE: loop exit
PB: predicated region body
PF: predicated region fallthrough
CT: control target
= control target key end

     0   :  { %v322_v0 = vmov 0.0   ;;  %vm323_vm0 = vmmov 0   ;;  %vm47_vm1 = vcmask 523264   ;;  %vm151_vm2 = vcmask 261120   ;;  %s452_s2 = inlined_call_operand.vmem [shape: f32[64,32], index: 2, kind: input, shape index: {}]   ;;  %s453_s4 = inlined_call_operand.vmem [shape: f32[32,16], index: 4, kind: input, shape index: {}]   ;;  %s454_s0 = inlined_call_operand.vmem [shape: f32[24,64], index: 0, kind: input, shape index: {}]   ;;  %s455_s1 = inlined_call_operand.vmem [shape: f32[24,64], index: 1, kind: input, shape index: {}]   ;;  %s456_s3 = inlined_call_operand.vmem [shape: f32[1,32], index: 3, kind: input, shape index: {}]   ;;  %s457_s5 = inlined_call_operand.vmem [shape: f32[1,16], index: 5, kind: input, shape index: {}]   ;;  %s458_s6 = inlined_call_operand.vmem [shape: f32[24,16], index: 6, kind: output, shape index: {}]  }
   0x1   :  { %278 = vmatprep.subr.mxu0 %v322_v0  ;;  %v39_v1 = vld [vmem:[%s452_s2 + $0x38] sm:$0xff]  ;;  %v38_v2 = vld [vmem:[%s452_s2 + $0x30] sm:$0xff]  ;;  %294 = vmatprep.mubr.msk.f32.mxu0 %vm323_vm0, %v322_v0  ;;  %v37_v3 = vld [vmem:[%s452_s2 + $0x28] sm:$0xff]  ;;  %vm244_vm3 = vcmask 130048  }
   0x2   :  { %279 = vmatpush3.msra.mxu0 %v39_v1  ;;  %303 = vmatprep.subr.mxu1 %v322_v0  ;;  %v36_v4 = vld [vmem:[%s452_s2 + $0x20] sm:$0xff]  ;;  %v143_v5 = vld [vmem:[%s453_s4 + $0x18] sm:$0xff]  ;;  %v34_v7 = vld [vmem:[%s452_s2 + $0x10] sm:$0xff] }
   0x3   :  { %280 = vmatprep.subr.mxu0 %v322_v0  ;;  %311 = vmatprep.mubr.msk.f32.mxu1 %vm323_vm0, %v322_v0  ;;  %v35_v6 = vld [vmem:[%s452_s2 + $0x18] sm:$0xff]  ;;  %v23_v8 = vld [vmem:[%s454_s0] sm:$0xff]  ;;  %v33_v10 = vld [vmem:[%s452_s2 + $0x8] sm:$0xff] }
   0x4   :  { %281 = vmatpush3.msra.mxu0 %v38_v2  ;;  %304 = vmatpush3.msra.mxu1 %v143_v5  ;;  %v26_v9 = vld [vmem:[%s455_s1] sm:$0xff]  ;;  %v24_v13 = vld [vmem:[%s454_s0 + $0x8] sm:$0xff]  ;;  %v25_v16 = vld [vmem:[%s454_s0 + $0x10] sm:$0xff] }
   0x5   :  { %282 = vmatprep.subr.mxu0 %v322_v0  ;;  %305 = vmatprep.subr.mxu1 %v322_v0  ;;  %v32_v11 = vld [vmem:[%s452_s2] sm:$0xff]  ;;  %v29_v12 = vmul.f32 %v26_v9, %v23_v8  ;;  %v27_v14 = vld [vmem:[%s455_s1 + $0x8] sm:$0xff]  ;;  %v28_v17 = vld [vmem:[%s455_s1 + $0x10] sm:$0xff] }
   0x6   :  { %283 = vmatpush3.msra.mxu0 %v37_v3  ;;  %v30_v15 = vmul.f32 %v27_v14, %v24_v13  ;;  %v31_v18 = vmul.f32 %v28_v17, %v25_v16  ;;  %v142_v19 = vld [vmem:[%s453_s4 + $0x10] sm:$0xff]  ;;  %v141_v20 = vld [vmem:[%s453_s4 + $0x8] sm:$0xff]  ;;  %v140_v21 = vld [vmem:[%s453_s4] sm:$0xff] }
   0x7   :  { %284 = vmatprep.subr.mxu0 %v322_v0  ;;  %306 = vmatpush3.msra.mxu1 %v142_v19  ;;  %v252_v22 = vld [vmem:[%s456_s3] ss:$0 sm:$0xff] }
   0x8   :  { %285 = vmatpush3.msra.mxu0 %v36_v4  ;;  %307 = vmatprep.subr.mxu1 %v322_v0  ;;  %v256_v35 = vld [vmem:[%s457_s5] ss:$0 sm:$0xff] }
   0x9   :  { %286 = vmatprep.subr.mxu0 %v322_v0  ;;  %308 = vmatpush3.msra.mxu1 %v141_v20 }
   0xa   :  { %287 = vmatpush3.msra.mxu0 %v35_v6  ;;  %309 = vmatprep.subr.mxu1 %v322_v0 }
   0xb   :  { %288 = vmatprep.subr.mxu0 %v322_v0  ;;  %310 = vmatpush3.msra.mxu1 %v140_v21 }
   0xc   :  { %289 = vmatpush3.msra.mxu0 %v34_v7 }
   0xd   :  { %290 = vmatprep.subr.mxu0 %v322_v0 }
   0xe   :  { %291 = vmatpush3.msra.mxu0 %v33_v10 }
   0xf   :  { %292 = vmatprep.subr.mxu0 %v322_v0 }
  0x10   :  { %293 = vmatpush3.msra.mxu0 %v32_v11 }
  0x11   :  { %295 = vmatmul.mubr.msk.f32.vlgmr.msra.gmra.mxu0 %vm47_vm1, %v29_v12 }
  0x12   :  { %297 = vmatprep.mubr.msk.f32.mxu0 %vm323_vm0, %v322_v0 }
  0x15   :  { %298 = vmatmul.mubr.msk.f32.gmra.mxu0 %vm47_vm1, %v30_v15 }
  0x16   :  { %300 = vmatprep.mubr.msk.f32.mxu0 %vm323_vm0, %v322_v0 }
  0x19   :  { %301 = vmatmul.mubr.msk.f32.gmra.mxu0 %vm47_vm1, %v31_v18 }
  0xd1   :  { %v123_v23 = vpop.f32.mrf.mxu0 }
  0xd2   :  { %v124_v24 = vadd.f32 %v252_v22, %v123_v23 }
  0xd3   :  { %v296_v25 = vpop.f32.mrf.mxu0 }
  0xd4   :  { %v137_v26 = vmax.f32 %v124_v24, 0.0 }
  0xd5   :  { %v128_v27 = vpop.f32.mrf.mxu0 }
  0xd6   :  { %v129_v28 = vadd.f32 %v252_v22, %v128_v27  ;;  %312 = vmatmul.mubr.msk.f32.vlgmr.msra.gmra.mxu1 %vm151_vm2, %v137_v26 }
  0xd7   :  { %v299_v29 = vpop.f32.mrf.mxu0  ;;  %314 = vmatprep.mubr.msk.f32.mxu1 %vm323_vm0, %v322_v0 }
  0xd8   :  { %v138_v30 = vmax.f32 %v129_v28, 0.0 }
  0xd9   :  { %v133_v31 = vpop.f32.mrf.mxu0 }
  0xda   :  { %v134_v32 = vadd.f32 %v252_v22, %v133_v31  ;;  %315 = vmatmul.mubr.msk.f32.gmra.mxu1 %vm151_vm2, %v138_v30 }
  0xdb   :  { %v302_v33 = vpop.f32.mrf.mxu0  ;;  %317 = vmatprep.mubr.msk.f32.mxu1 %vm323_vm0, %v322_v0 }
  0xdc   :  { %v139_v34 = vmax.f32 %v134_v32, 0.0 }
  0xde   :  { %318 = vmatmul.mubr.msk.f32.gmra.mxu1 %vm151_vm2, %v139_v34 }
 0x196   :  { %v227_v36 = vpop.f32.mrf.mxu1 }
 0x197   :  { %v228_v37 = vadd.f32 %v256_v35, %v227_v36 }
 0x198   :  { %v313_v38 = vpop.f32.mrf.mxu1 }
 0x199   :  { %v241_v39 = vmax.f32 %v228_v37, 0.0 }
 0x19a   :  { %v232_v40 = vpop.f32.mrf.mxu1 }
 0x19b   :  { %245 = vst.msk [vmem:[%s458_s6] sm:$0xff] %vm244_vm3, %v241_v39  ;;  %v233_v41 = vadd.f32 %v256_v35, %v232_v40 }
 0x19c   :  { %v316_v42 = vpop.f32.mrf.mxu1 }
 0x19d   :  { %v242_v43 = vmax.f32 %v233_v41, 0.0 }
 0x19e   :  { %v237_v44 = vpop.f32.mrf.mxu1 }
 0x19f   :  { %246 = vst.msk [vmem:[%s458_s6 + $0x8] sm:$0xff] %vm244_vm3, %v242_v43  ;;  %v238_v45 = vadd.f32 %v256_v35, %v237_v44 }
 0x1a0   :  { %v319_v46 = vpop.f32.mrf.mxu1 }
 0x1a1   :  { %v243_v47 = vmax.f32 %v238_v45, 0.0 }
 0x1a3   :  { %247 = vst.msk [vmem:[%s458_s6 + $0x10] sm:$0xff] %vm244_vm3, %v243_v47 }

</bundles_post_ra>
